<compile_context>
chip_gen: v5e
topology: v5e:2x2
jax: 0.10.0
libtpu: 0.0.40
codegen_flags: <defaults>
</compile_context>

<pallas_src>
import math

import jax
import jax.numpy as jnp
from jax.experimental import pallas as pl
from jax.experimental.pallas import tpu as pltpu


def _round_up(v, m):
    return (v + m - 1) // m * m


def _pick_batch_block(B, modes1, N):
    """Batch elements per grid step (folded into the DFT matmul's row axis)."""
    target_rows = 256                                          # M*bb rows per DFT matmul
    bb = max(1, min(B, -(-target_rows // max(modes1, 1))))
    if B > 1:
        # keep >= 2 grid steps so v7x can shard the grid across both TensorCores
        bb = min(bb, -(-B // 2))
    # keep the (double-buffered) x block comfortably inside scoped VMEM
    max_bb = max(1, (8 * 1024 * 1024) // (modes1 * N * 4))
    return max(1, min(bb, max_bb))


def _spectral_conv1d_kernel(xt_ref, ftr_ref, fti_ref, wr_ref, wi_ref,
                            ore_ref, oim_ref):
    # Static shapes:
    #   xt_ref : [M*bb, N]   row (m*bb + b) = x[b, :, m] for the current batch block
    #   ftr/fti: [N, KR]     real/imag rfft (DFT) matrix transposed, KR = round_up(K, 8),
    #                        resident in VMEM (constant index map)
    #   wr/wi  : [M, KR, OP] complex spectral weights, contraction rows K..KR-1 and output
    #                        lanes out_ch..OP-1 are zero (so padding contributes exactly 0)
    #   ore/oim: [M, bb, OP] lane-dense (OP = round_up(out_ch, 128)) per-mode outputs
    M, KR, OP = wr_ref.shape
    MB, _ = xt_ref.shape
    bb = MB // M

    xt = xt_ref[...]

    # rfft over the time axis (dim=-2 of the original x), 'ortho' norm, as two real matmuls
    # on the MXU.  One big [M*bb, N] @ [N, KR] matmul per grid step (batch-blocked).
    xf_re = jnp.dot(xt, ftr_ref[...], preferred_element_type=jnp.float32)   # [M*bb, KR]
    xf_im = jnp.dot(xt, fti_ref[...], preferred_element_type=jnp.float32)   # [M*bb, KR]

    # Complex per-mode mixing on the MXU:
    #   out[b, o, m] = sum_k x_ft[b, k, m] * w[k, o, m]
    # modes1 (M) is a small static hyper-parameter, so a short unrolled loop of 2-D MXU
    # matmuls is used (the pathological K-length VPU loop of the previous version is gone).
    for m in range(M):
        lo = m * bb
        xr_m = xf_re[lo:lo + bb, :]                                          # [bb, KR]
        xi_m = xf_im[lo:lo + bb, :]
        wr_m = wr_ref[m]                                                     # [KR, OP]
        wi_m = wi_ref[m]
        rr = jnp.dot(xr_m, wr_m, preferred_element_type=jnp.float32)         # [bb, OP]
        ii = jnp.dot(xi_m, wi_m, preferred_element_type=jnp.float32)
        ri = jnp.dot(xr_m, wi_m, preferred_element_type=jnp.float32)
        ir = jnp.dot(xi_m, wr_m, preferred_element_type=jnp.float32)
        # single full-lane-width unmasked stores (OP is a multiple of 128)
        ore_ref[m, :, :] = rr - ii
        oim_ref[m, :, :] = ri + ir


def spectral_conv1d_forward(x, weights1_real, weights1_imag, *, dft_dtype=jnp.float32):
    """SpectralConv1d forward.

    x:        [B, N, C] float32 (FFT is taken over N = dim -2, as in the PyTorch module)
    weights1: real/imag parts of the module's complex weights1, [in_channels, out_channels,
              modes1] with in_channels == N//2 + 1 (required by the module's einsum).
    returns:  (result [B, out_channels, 2*(N//2+1)] float32,
               out_ft [B, out_channels, N//2+1] complex64)
    """
    B, N, C = x.shape
    K = N // 2 + 1
    in_ch, out_ch, modes1 = weights1_real.shape
    assert in_ch == K, "SpectralConv1d requires in_channels == x.shape[-2] // 2 + 1"
    assert weights1_imag.shape == weights1_real.shape
    assert modes1 <= C and modes1 <= K

    M = modes1
    KR = _round_up(K, 8)          # mixing contraction axis (zero-padded in the weights)
    OP = _round_up(out_ch, 128)   # lane-dense output width (unmasked full stores)

    # --- batch blocking -------------------------------------------------------------
    bb = _pick_batch_block(B, M, N)
    nb = -(-B // bb)
    B_pad = nb * bb

    # --- operand layout (wrapper-side layout plumbing, not compute) ------------------
    # Keep only the modes1 channels the mixing consumes; fold (mode, batch) into the row
    # axis of the per-step DFT matmul: x_t[i, m*bb + b, n] = x[i*bb + b, n, m].
    x_m = x[:, :, :M]
    if B_pad != B:
        x_m = jnp.pad(x_m, ((0, B_pad - B), (0, 0), (0, 0)))
    x_t = (x_m.reshape(nb, bb, N, M)
               .transpose(0, 3, 1, 2)
               .reshape(nb, M * bb, N)
               .astype(dft_dtype))

    # rfft (dim=-2, 'ortho') as a real matmul: x_ft = x^T @ F^T, F[k, n] = e^{-2*pi*i*k*n/N}/sqrt(N).
    # (k*n) mod N is computed in int32 so the phase stays exact at large N (valid for N < ~46k).
    nn = jnp.arange(N, dtype=jnp.int32)[:, None]
    kk = jnp.arange(KR, dtype=jnp.int32)[None, :]
    phase = (2.0 * math.pi / N) * jnp.asarray((nn * kk) % N, jnp.float32)
    inv_sqrt_n = 1.0 / math.sqrt(N)
    ftr = (jnp.cos(phase) * inv_sqrt_n).astype(dft_dtype)     # [N, KR]
    fti = (-jnp.sin(phase) * inv_sqrt_n).astype(dft_dtype)    # [N, KR]

    # Weights [K, O, M] -> [M, KR, OP], zero padded so the in-kernel matmul directly
    # produces the lane-padded output tile with exact zeros in the padding.
    def _prep_w(w):
        wt = jnp.transpose(w, (2, 0, 1)).astype(jnp.float32)                # [M, K, O]
        return jnp.pad(wt, ((0, 0), (0, KR - K), (0, OP - out_ch)))         # [M, KR, OP]

    wtr = _prep_w(weights1_real)
    wti = _prep_w(weights1_imag)

    # --- explicit VMEM budget (v5e scoped default is 16 MiB; v7x has 64 MiB physical) ---
    isz = jnp.dtype(dft_dtype).itemsize
    vmem_bytes = (2 * M * bb * N * isz            # x block, double buffered
                  + 2 * 2 * N * KR * isz          # F^T real/imag
                  + 2 * 2 * M * KR * OP * 4       # W real/imag
                  + 2 * 2 * M * bb * OP * 4)      # two outputs, double buffered
    vmem_limit = int(min(64 * 2**20, max(32 * 2**20, 2 * vmem_bytes)))

    flops = nb * (2 * 2 * (M * bb) * N * KR + 8 * M * bb * KR * OP)
    bytes_accessed = ((x_t.size + ftr.size + fti.size) * isz
                      + (wtr.size + wti.size + 2 * nb * M * bb * OP) * 4)

    out_shapes = (
        jax.ShapeDtypeStruct((nb, M, bb, OP), jnp.float32),   # Re(out_ft[:, :, :M])
        jax.ShapeDtypeStruct((nb, M, bb, OP), jnp.float32),   # Im(out_ft[:, :, :M])
    )
    out_spec = pl.BlockSpec((None, M, bb, OP), lambda i: (i, 0, 0, 0))

    ore_p, oim_p = pl.pallas_call(
        _spectral_conv1d_kernel,
        out_shape=out_shapes,
        grid=(nb,),
        in_specs=[
            pl.BlockSpec((None, M * bb, N), lambda i: (i, 0, 0)),   # x block per step
            pl.BlockSpec((N, KR), lambda i: (0, 0)),                # F^T real  (resident)
            pl.BlockSpec((N, KR), lambda i: (0, 0)),                # F^T imag  (resident)
            pl.BlockSpec((M, KR, OP), lambda i: (0, 0, 0)),         # Re(W)     (resident)
            pl.BlockSpec((M, KR, OP), lambda i: (0, 0, 0)),         # Im(W)     (resident)
        ],
        out_specs=(out_spec, out_spec),
        compiler_params=pltpu.CompilerParams(
            dimension_semantics=("parallel",),
            vmem_limit_bytes=vmem_limit),
        cost_estimate=pl.CostEstimate(flops=int(flops), transcendentals=0,
                                      bytes_accessed=int(bytes_accessed)),
    )(x_t, ftr, fti, wtr, wti)

    # --- wrapper-side unpack / post-processing ---------------------------------------
    def _unpack(o):
        o = o[:, :, :, :out_ch]                                           # [nb, M, bb, O]
        o = o.transpose(0, 2, 3, 1).reshape(B_pad, out_ch, M)[:B]         # [B, O, M]
        return jnp.pad(o, ((0, 0), (0, 0), (0, K - M)))                   # [B, O, K]

    out_re = _unpack(ore_p)
    out_im = _unpack(oim_p)

    out_ft = jax.lax.complex(out_re, out_im)
    # TODO(synk): torch.angle (atan2) has no guaranteed Mosaic lowering, so magnitude and
    # phase are computed here in the wrapper from the kernel's real/imag outputs.
    r = jnp.abs(out_ft)
    p = jnp.angle(out_ft)
    result = jnp.concatenate([r, p], axis=-1)
    return result, out_ft


def _reference(x, wr, wi):
    """Pure-JAX mirror of the PyTorch forward."""
    in_ch, out_ch, modes1 = wr.shape
    B, N, C = x.shape
    K = N // 2 + 1
    x_ft = jnp.fft.rfft(x, axis=-2, norm="ortho")                    # [B, K, C] complex64
    w = (wr + 1j * wi).astype(jnp.complex64)
    out_modes = jnp.einsum("bix,iox->box", x_ft[:, :, :modes1], w)   # [B, O, modes1]
    out_ft = jnp.zeros((B, out_ch, K), jnp.complex64)
    out_ft = out_ft.at[:, :, :modes1].set(out_modes)
    r = jnp.abs(out_ft)
    p = jnp.angle(out_ft)
    return jnp.concatenate([r, p], axis=-1), out_ft


if __name__ == "__main__":
    key = jax.random.PRNGKey(0)
    kx, kwr, kwi = jax.random.split(key, 3)

    # x: [B, N, C]; the module FFTs dim=-2 and requires in_channels == N//2 + 1.
    batch, seq_len, feat = 8, 16, 8
    in_channels = seq_len // 2 + 1      # = 9
    out_channels = 6
    modes1 = 4

    x = jax.random.normal(kx, (batch, seq_len, feat), jnp.float32)
    scale = 1.0 / (in_channels * out_channels)
    # torch.rand(..., dtype=cfloat) draws U[0,1) for both real and imag parts.
    wr = scale * jax.random.uniform(kwr, (in_channels, out_channels, modes1), jnp.float32)
    wi = scale * jax.random.uniform(kwi, (in_channels, out_channels, modes1), jnp.float32)

    result, out_ft = jax.jit(spectral_conv1d_forward)(x, wr, wi)
    result = jax.block_until_ready(result)
    out_ft = jax.block_until_ready(out_ft)

    ref_result, ref_out_ft = _reference(x, wr, wi)

    assert result.shape == (batch, out_channels, 2 * in_channels)
    assert out_ft.shape == (batch, out_channels, in_channels)
    assert jnp.allclose(out_ft, ref_out_ft, atol=1e-5, rtol=1e-5)
    K = in_channels
    assert jnp.allclose(result[..., :K], ref_result[..., :K], atol=1e-5, rtol=1e-5)  # |out_ft|
    # phase (atan2) is ill-conditioned near the origin -> looser tolerance
    assert jnp.allclose(result[..., K:], ref_result[..., K:], atol=1e-2)

    print("KERNEL_OK")
</pallas_src>

<mosaic_0001>
module attributes {stable_mosaic.version = 11 : i64} {
  func.func @_spectral_conv1d_kernel(%arg0: i32, %arg1: memref<1x16x16xf32, #tpu.memory_space<vmem>>, %arg2: memref<16x16xf32, #tpu.memory_space<vmem>>, %arg3: memref<16x16xf32, #tpu.memory_space<vmem>>, %arg4: memref<4x16x128xf32, #tpu.memory_space<vmem>>, %arg5: memref<4x16x128xf32, #tpu.memory_space<vmem>>, %arg6: memref<1x4x4x128xf32, #tpu.memory_space<vmem>>, %arg7: memref<1x4x4x128xf32, #tpu.memory_space<vmem>>) attributes {dimension_semantics = [#tpu.dimension_semantics<parallel>], iteration_bounds = array<i64: 2>, scalar_prefetch = 0 : i64, scratch_operands = 0 : i64, tpu.core_type = #tpu.core_type<tc>, window_params = [{transform_indices = @transform_0, window_bounds = array<i64: 1, 16, 16>}, {pipeline_mode = #tpu.pipeline_mode<synchronous>, transform_indices = @transform_1, window_bounds = array<i64: 16, 16>}, {pipeline_mode = #tpu.pipeline_mode<synchronous>, transform_indices = @transform_2, window_bounds = array<i64: 16, 16>}, {pipeline_mode = #tpu.pipeline_mode<synchronous>, transform_indices = @transform_3, window_bounds = array<i64: 4, 16, 128>}, {pipeline_mode = #tpu.pipeline_mode<synchronous>, transform_indices = @transform_4, window_bounds = array<i64: 4, 16, 128>}, {transform_indices = @transform_5, window_bounds = array<i64: 1, 4, 4, 128>}, {transform_indices = @transform_6, window_bounds = array<i64: 1, 4, 4, 128>}]} {
    %c0 = arith.constant 0 : index
    %c0_0 = arith.constant 0 : index
    %c0_1 = arith.constant 0 : index
    %0 = vector.load %arg1[%c0, %c0_0, %c0_1] : memref<1x16x16xf32, #tpu.memory_space<vmem>>, vector<1x16x16xf32>
    %1 = vector.shape_cast %0 : vector<1x16x16xf32> to vector<16x16xf32>
    %c0_2 = arith.constant 0 : index
    %c0_3 = arith.constant 0 : index
    %2 = vector.load %arg2[%c0_2, %c0_3] : memref<16x16xf32, #tpu.memory_space<vmem>>, vector<16x16xf32>
    %cst = arith.constant dense<0.000000e+00> : vector<16x16xf32>
    %3 = tpu.matmul %1, %2, %cst {dimension_numbers = #tpu.dot_dimension_numbers<[1], [0], [0], [1], [0, 0, 1, 1], [], []>} : vector<16x16xf32>, vector<16x16xf32>, vector<16x16xf32> -> vector<16x16xf32>
    %c0_4 = arith.constant 0 : index
    %c0_5 = arith.constant 0 : index
    %4 = vector.load %arg3[%c0_4, %c0_5] : memref<16x16xf32, #tpu.memory_space<vmem>>, vector<16x16xf32>
    %cst_6 = arith.constant dense<0.000000e+00> : vector<16x16xf32>
    %5 = tpu.matmul %1, %4, %cst_6 {dimension_numbers = #tpu.dot_dimension_numbers<[1], [0], [0], [1], [0, 0, 1, 1], [], []>} : vector<16x16xf32>, vector<16x16xf32>, vector<16x16xf32> -> vector<16x16xf32>
    %6 = vector.extract_strided_slice %3 {offsets = [0, 0], sizes = [4, 16], strides = [1, 1]} : vector<16x16xf32> to vector<4x16xf32>
    %7 = vector.extract_strided_slice %5 {offsets = [0, 0], sizes = [4, 16], strides = [1, 1]} : vector<16x16xf32> to vector<4x16xf32>
    %c0_7 = arith.constant 0 : index
    %c0_8 = arith.constant 0 : index
    %c0_9 = arith.constant 0 : index
    %8 = vector.load %arg4[%c0_7, %c0_8, %c0_9] : memref<4x16x128xf32, #tpu.memory_space<vmem>>, vector<1x16x128xf32>
    %9 = vector.shape_cast %8 : vector<1x16x128xf32> to vector<16x128xf32>
    %c0_10 = arith.constant 0 : index
    %c0_11 = arith.constant 0 : index
    %c0_12 = arith.constant 0 : index
    %10 = vector.load %arg5[%c0_10, %c0_11, %c0_12] : memref<4x16x128xf32, #tpu.memory_space<vmem>>, vector<1x16x128xf32>
    %11 = vector.shape_cast %10 : vector<1x16x128xf32> to vector<16x128xf32>
    %cst_13 = arith.constant dense<0.000000e+00> : vector<4x128xf32>
    %12 = tpu.matmul %6, %9, %cst_13 {dimension_numbers = #tpu.dot_dimension_numbers<[1], [0], [0], [1], [0, 0, 1, 1], [], []>} : vector<4x16xf32>, vector<16x128xf32>, vector<4x128xf32> -> vector<4x128xf32>
    %cst_14 = arith.constant dense<0.000000e+00> : vector<4x128xf32>
    %13 = tpu.matmul %7, %11, %cst_14 {dimension_numbers = #tpu.dot_dimension_numbers<[1], [0], [0], [1], [0, 0, 1, 1], [], []>} : vector<4x16xf32>, vector<16x128xf32>, vector<4x128xf32> -> vector<4x128xf32>
    %cst_15 = arith.constant dense<0.000000e+00> : vector<4x128xf32>
    %14 = tpu.matmul %6, %11, %cst_15 {dimension_numbers = #tpu.dot_dimension_numbers<[1], [0], [0], [1], [0, 0, 1, 1], [], []>} : vector<4x16xf32>, vector<16x128xf32>, vector<4x128xf32> -> vector<4x128xf32>
    %cst_16 = arith.constant dense<0.000000e+00> : vector<4x128xf32>
    %15 = tpu.matmul %7, %9, %cst_16 {dimension_numbers = #tpu.dot_dimension_numbers<[1], [0], [0], [1], [0, 0, 1, 1], [], []>} : vector<4x16xf32>, vector<16x128xf32>, vector<4x128xf32> -> vector<4x128xf32>
    %16 = arith.subf %12, %13 : vector<4x128xf32>
    %c0_17 = arith.constant 0 : index
    %c0_18 = arith.constant 0 : index
    %c0_19 = arith.constant 0 : index
    %c0_20 = arith.constant 0 : index
    %17 = vector.load %arg6[%c0_17, %c0_18, %c0_19, %c0_20] : memref<1x4x4x128xf32, #tpu.memory_space<vmem>>, vector<1x1x4x128xf32>
    %18 = vector.shape_cast %17 : vector<1x1x4x128xf32> to vector<4x128xf32>
    %19 = vector.shape_cast %16 : vector<4x128xf32> to vector<1x1x4x128xf32>
    tpu.vector_store %arg6[%c0_17, %c0_18, %c0_19, %c0_20], %19 {strides = array<i32>} : memref<1x4x4x128xf32, #tpu.memory_space<vmem>>, vector<1x1x4x128xf32>,
    %20 = arith.addf %14, %15 : vector<4x128xf32>
    %c0_21 = arith.constant 0 : index
    %c0_22 = arith.constant 0 : index
    %c0_23 = arith.constant 0 : index
    %c0_24 = arith.constant 0 : index
    %21 = vector.load %arg7[%c0_21, %c0_22, %c0_23, %c0_24] : memref<1x4x4x128xf32, #tpu.memory_space<vmem>>, vector<1x1x4x128xf32>
    %22 = vector.shape_cast %21 : vector<1x1x4x128xf32> to vector<4x128xf32>
    %23 = vector.shape_cast %20 : vector<4x128xf32> to vector<1x1x4x128xf32>
    tpu.vector_store %arg7[%c0_21, %c0_22, %c0_23, %c0_24], %23 {strides = array<i32>} : memref<1x4x4x128xf32, #tpu.memory_space<vmem>>, vector<1x1x4x128xf32>,
    %24 = vector.extract_strided_slice %3 {offsets = [4, 0], sizes = [4, 16], strides = [1, 1]} : vector<16x16xf32> to vector<4x16xf32>
    %25 = vector.extract_strided_slice %5 {offsets = [4, 0], sizes = [4, 16], strides = [1, 1]} : vector<16x16xf32> to vector<4x16xf32>
    %c1 = arith.constant 1 : index
    %c0_25 = arith.constant 0 : index
    %c0_26 = arith.constant 0 : index
    %26 = vector.load %arg4[%c1, %c0_25, %c0_26] : memref<4x16x128xf32, #tpu.memory_space<vmem>>, vector<1x16x128xf32>
    %27 = vector.shape_cast %26 : vector<1x16x128xf32> to vector<16x128xf32>
    %c1_27 = arith.constant 1 : index
    %c0_28 = arith.constant 0 : index
    %c0_29 = arith.constant 0 : index
    %28 = vector.load %arg5[%c1_27, %c0_28, %c0_29] : memref<4x16x128xf32, #tpu.memory_space<vmem>>, vector<1x16x128xf32>
    %29 = vector.shape_cast %28 : vector<1x16x128xf32> to vector<16x128xf32>
    %cst_30 = arith.constant dense<0.000000e+00> : vector<4x128xf32>
    %30 = tpu.matmul %24, %27, %cst_30 {dimension_numbers = #tpu.dot_dimension_numbers<[1], [0], [0], [1], [0, 0, 1, 1], [], []>} : vector<4x16xf32>, vector<16x128xf32>, vector<4x128xf32> -> vector<4x128xf32>
    %cst_31 = arith.constant dense<0.000000e+00> : vector<4x128xf32>
    %31 = tpu.matmul %25, %29, %cst_31 {dimension_numbers = #tpu.dot_dimension_numbers<[1], [0], [0], [1], [0, 0, 1, 1], [], []>} : vector<4x16xf32>, vector<16x128xf32>, vector<4x128xf32> -> vector<4x128xf32>
    %cst_32 = arith.constant dense<0.000000e+00> : vector<4x128xf32>
    %32 = tpu.matmul %24, %29, %cst_32 {dimension_numbers = #tpu.dot_dimension_numbers<[1], [0], [0], [1], [0, 0, 1, 1], [], []>} : vector<4x16xf32>, vector<16x128xf32>, vector<4x128xf32> -> vector<4x128xf32>
    %cst_33 = arith.constant dense<0.000000e+00> : vector<4x128xf32>
    %33 = tpu.matmul %25, %27, %cst_33 {dimension_numbers = #tpu.dot_dimension_numbers<[1], [0], [0], [1], [0, 0, 1, 1], [], []>} : vector<4x16xf32>, vector<16x128xf32>, vector<4x128xf32> -> vector<4x128xf32>
    %34 = arith.subf %30, %31 : vector<4x128xf32>
    %c0_34 = arith.constant 0 : index
    %c1_35 = arith.constant 1 : index
    %c0_36 = arith.constant 0 : index
    %c0_37 = arith.constant 0 : index
    %35 = vector.load %arg6[%c0_34, %c1_35, %c0_36, %c0_37] : memref<1x4x4x128xf32, #tpu.memory_space<vmem>>, vector<1x1x4x128xf32>
    %36 = vector.shape_cast %35 : vector<1x1x4x128xf32> to vector<4x128xf32>
    %37 = vector.shape_cast %34 : vector<4x128xf32> to vector<1x1x4x128xf32>
    tpu.vector_store %arg6[%c0_34, %c1_35, %c0_36, %c0_37], %37 {strides = array<i32>} : memref<1x4x4x128xf32, #tpu.memory_space<vmem>>, vector<1x1x4x128xf32>,
    %38 = arith.addf %32, %33 : vector<4x128xf32>
    %c0_38 = arith.constant 0 : index
    %c1_39 = arith.constant 1 : index
    %c0_40 = arith.constant 0 : index
    %c0_41 = arith.constant 0 : index
    %39 = vector.load %arg7[%c0_38, %c1_39, %c0_40, %c0_41] : memref<1x4x4x128xf32, #tpu.memory_space<vmem>>, vector<1x1x4x128xf32>
    %40 = vector.shape_cast %39 : vector<1x1x4x128xf32> to vector<4x128xf32>
    %41 = vector.shape_cast %38 : vector<4x128xf32> to vector<1x1x4x128xf32>
    tpu.vector_store %arg7[%c0_38, %c1_39, %c0_40, %c0_41], %41 {strides = array<i32>} : memref<1x4x4x128xf32, #tpu.memory_space<vmem>>, vector<1x1x4x128xf32>,
    %42 = vector.extract_strided_slice %3 {offsets = [8, 0], sizes = [4, 16], strides = [1, 1]} : vector<16x16xf32> to vector<4x16xf32>
    %43 = vector.extract_strided_slice %5 {offsets = [8, 0], sizes = [4, 16], strides = [1, 1]} : vector<16x16xf32> to vector<4x16xf32>
    %c2 = arith.constant 2 : index
    %c0_42 = arith.constant 0 : index
    %c0_43 = arith.constant 0 : index
    %44 = vector.load %arg4[%c2, %c0_42, %c0_43] : memref<4x16x128xf32, #tpu.memory_space<vmem>>, vector<1x16x128xf32>
    %45 = vector.shape_cast %44 : vector<1x16x128xf32> to vector<16x128xf32>
    %c2_44 = arith.constant 2 : index
    %c0_45 = arith.constant 0 : index
    %c0_46 = arith.constant 0 : index
    %46 = vector.load %arg5[%c2_44, %c0_45, %c0_46] : memref<4x16x128xf32, #tpu.memory_space<vmem>>, vector<1x16x128xf32>
    %47 = vector.shape_cast %46 : vector<1x16x128xf32> to vector<16x128xf32>
    %cst_47 = arith.constant dense<0.000000e+00> : vector<4x128xf32>
    %48 = tpu.matmul %42, %45, %cst_47 {dimension_numbers = #tpu.dot_dimension_numbers<[1], [0], [0], [1], [0, 0, 1, 1], [], []>} : vector<4x16xf32>, vector<16x128xf32>, vector<4x128xf32> -> vector<4x128xf32>
    %cst_48 = arith.constant dense<0.000000e+00> : vector<4x128xf32>
    %49 = tpu.matmul %43, %47, %cst_48 {dimension_numbers = #tpu.dot_dimension_numbers<[1], [0], [0], [1], [0, 0, 1, 1], [], []>} : vector<4x16xf32>, vector<16x128xf32>, vector<4x128xf32> -> vector<4x128xf32>
    %cst_49 = arith.constant dense<0.000000e+00> : vector<4x128xf32>
    %50 = tpu.matmul %42, %47, %cst_49 {dimension_numbers = #tpu.dot_dimension_numbers<[1], [0], [0], [1], [0, 0, 1, 1], [], []>} : vector<4x16xf32>, vector<16x128xf32>, vector<4x128xf32> -> vector<4x128xf32>
    %cst_50 = arith.constant dense<0.000000e+00> : vector<4x128xf32>
    %51 = tpu.matmul %43, %45, %cst_50 {dimension_numbers = #tpu.dot_dimension_numbers<[1], [0], [0], [1], [0, 0, 1, 1], [], []>} : vector<4x16xf32>, vector<16x128xf32>, vector<4x128xf32> -> vector<4x128xf32>
    %52 = arith.subf %48, %49 : vector<4x128xf32>
    %c0_51 = arith.constant 0 : index
    %c2_52 = arith.constant 2 : index
    %c0_53 = arith.constant 0 : index
    %c0_54 = arith.constant 0 : index
    %53 = vector.load %arg6[%c0_51, %c2_52, %c0_53, %c0_54] : memref<1x4x4x128xf32, #tpu.memory_space<vmem>>, vector<1x1x4x128xf32>
    %54 = vector.shape_cast %53 : vector<1x1x4x128xf32> to vector<4x128xf32>
    %55 = vector.shape_cast %52 : vector<4x128xf32> to vector<1x1x4x128xf32>
    tpu.vector_store %arg6[%c0_51, %c2_52, %c0_53, %c0_54], %55 {strides = array<i32>} : memref<1x4x4x128xf32, #tpu.memory_space<vmem>>, vector<1x1x4x128xf32>,
    %56 = arith.addf %50, %51 : vector<4x128xf32>
    %c0_55 = arith.constant 0 : index
    %c2_56 = arith.constant 2 : index
    %c0_57 = arith.constant 0 : index
    %c0_58 = arith.constant 0 : index
    %57 = vector.load %arg7[%c0_55, %c2_56, %c0_57, %c0_58] : memref<1x4x4x128xf32, #tpu.memory_space<vmem>>, vector<1x1x4x128xf32>
    %58 = vector.shape_cast %57 : vector<1x1x4x128xf32> to vector<4x128xf32>
    %59 = vector.shape_cast %56 : vector<4x128xf32> to vector<1x1x4x128xf32>
    tpu.vector_store %arg7[%c0_55, %c2_56, %c0_57, %c0_58], %59 {strides = array<i32>} : memref<1x4x4x128xf32, #tpu.memory_space<vmem>>, vector<1x1x4x128xf32>,
    %60 = vector.extract_strided_slice %3 {offsets = [12, 0], sizes = [4, 16], strides = [1, 1]} : vector<16x16xf32> to vector<4x16xf32>
    %61 = vector.extract_strided_slice %5 {offsets = [12, 0], sizes = [4, 16], strides = [1, 1]} : vector<16x16xf32> to vector<4x16xf32>
    %c3 = arith.constant 3 : index
    %c0_59 = arith.constant 0 : index
    %c0_60 = arith.constant 0 : index
    %62 = vector.load %arg4[%c3, %c0_59, %c0_60] : memref<4x16x128xf32, #tpu.memory_space<vmem>>, vector<1x16x128xf32>
    %63 = vector.shape_cast %62 : vector<1x16x128xf32> to vector<16x128xf32>
    %c3_61 = arith.constant 3 : index
    %c0_62 = arith.constant 0 : index
    %c0_63 = arith.constant 0 : index
    %64 = vector.load %arg5[%c3_61, %c0_62, %c0_63] : memref<4x16x128xf32, #tpu.memory_space<vmem>>, vector<1x16x128xf32>
    %65 = vector.shape_cast %64 : vector<1x16x128xf32> to vector<16x128xf32>
    %cst_64 = arith.constant dense<0.000000e+00> : vector<4x128xf32>
    %66 = tpu.matmul %60, %63, %cst_64 {dimension_numbers = #tpu.dot_dimension_numbers<[1], [0], [0], [1], [0, 0, 1, 1], [], []>} : vector<4x16xf32>, vector<16x128xf32>, vector<4x128xf32> -> vector<4x128xf32>
    %cst_65 = arith.constant dense<0.000000e+00> : vector<4x128xf32>
    %67 = tpu.matmul %61, %65, %cst_65 {dimension_numbers = #tpu.dot_dimension_numbers<[1], [0], [0], [1], [0, 0, 1, 1], [], []>} : vector<4x16xf32>, vector<16x128xf32>, vector<4x128xf32> -> vector<4x128xf32>
    %cst_66 = arith.constant dense<0.000000e+00> : vector<4x128xf32>
    %68 = tpu.matmul %60, %65, %cst_66 {dimension_numbers = #tpu.dot_dimension_numbers<[1], [0], [0], [1], [0, 0, 1, 1], [], []>} : vector<4x16xf32>, vector<16x128xf32>, vector<4x128xf32> -> vector<4x128xf32>
    %cst_67 = arith.constant dense<0.000000e+00> : vector<4x128xf32>
    %69 = tpu.matmul %61, %63, %cst_67 {dimension_numbers = #tpu.dot_dimension_numbers<[1], [0], [0], [1], [0, 0, 1, 1], [], []>} : vector<4x16xf32>, vector<16x128xf32>, vector<4x128xf32> -> vector<4x128xf32>
    %70 = arith.subf %66, %67 : vector<4x128xf32>
    %c0_68 = arith.constant 0 : index
    %c3_69 = arith.constant 3 : index
    %c0_70 = arith.constant 0 : index
    %c0_71 = arith.constant 0 : index
    %71 = vector.load %arg6[%c0_68, %c3_69, %c0_70, %c0_71] : memref<1x4x4x128xf32, #tpu.memory_space<vmem>>, vector<1x1x4x128xf32>
    %72 = vector.shape_cast %71 : vector<1x1x4x128xf32> to vector<4x128xf32>
    %73 = vector.shape_cast %70 : vector<4x128xf32> to vector<1x1x4x128xf32>
    tpu.vector_store %arg6[%c0_68, %c3_69, %c0_70, %c0_71], %73 {strides = array<i32>} : memref<1x4x4x128xf32, #tpu.memory_space<vmem>>, vector<1x1x4x128xf32>,
    %74 = arith.addf %68, %69 : vector<4x128xf32>
    %c0_72 = arith.constant 0 : index
    %c3_73 = arith.constant 3 : index
    %c0_74 = arith.constant 0 : index
    %c0_75 = arith.constant 0 : index
    %75 = vector.load %arg7[%c0_72, %c3_73, %c0_74, %c0_75] : memref<1x4x4x128xf32, #tpu.memory_space<vmem>>, vector<1x1x4x128xf32>
    %76 = vector.shape_cast %75 : vector<1x1x4x128xf32> to vector<4x128xf32>
    %77 = vector.shape_cast %74 : vector<4x128xf32> to vector<1x1x4x128xf32>
    tpu.vector_store %arg7[%c0_72, %c3_73, %c0_74, %c0_75], %77 {strides = array<i32>} : memref<1x4x4x128xf32, #tpu.memory_space<vmem>>, vector<1x1x4x128xf32>,
    return
  }
  func.func @transform_0(%arg0: i32) -> (i32, i32, i32) {
    %c0_i32 = arith.constant 0 : i32
    %c0_i32_0 = arith.constant 0 : i32
    %c0_i32_1 = arith.constant 0 : i32
    return %arg0, %c0_i32, %c0_i32_0 : i32, i32, i32
  }
  func.func @transform_1(%arg0: i32) -> (i32, i32) {
    %c0_i32 = arith.constant 0 : i32
    %c0_i32_0 = arith.constant 0 : i32
    %c0_i32_1 = arith.constant 0 : i32
    return %c0_i32, %c0_i32_0 : i32, i32
  }
  func.func @transform_2(%arg0: i32) -> (i32, i32) {
    %c0_i32 = arith.constant 0 : i32
    %c0_i32_0 = arith.constant 0 : i32
    %c0_i32_1 = arith.constant 0 : i32
    return %c0_i32, %c0_i32_0 : i32, i32
  }
  func.func @transform_3(%arg0: i32) -> (i32, i32, i32) {
    %c0_i32 = arith.constant 0 : i32
    %c0_i32_0 = arith.constant 0 : i32
    %c0_i32_1 = arith.constant 0 : i32
    %c0_i32_2 = arith.constant 0 : i32
    return %c0_i32, %c0_i32_0, %c0_i32_1 : i32, i32, i32
  }
  func.func @transform_4(%arg0: i32) -> (i32, i32, i32) {
    %c0_i32 = arith.constant 0 : i32
    %c0_i32_0 = arith.constant 0 : i32
    %c0_i32_1 = arith.constant 0 : i32
    %c0_i32_2 = arith.constant 0 : i32
    return %c0_i32, %c0_i32_0, %c0_i32_1 : i32, i32, i32
  }
  func.func @transform_5(%arg0: i32) -> (i32, i32, i32, i32) {
    %c0_i32 = arith.constant 0 : i32
    %c0_i32_0 = arith.constant 0 : i32
    %c0_i32_1 = arith.constant 0 : i32
    %c0_i32_2 = arith.constant 0 : i32
    return %arg0, %c0_i32, %c0_i32_0, %c0_i32_1 : i32, i32, i32, i32
  }
  func.func @transform_6(%arg0: i32) -> (i32, i32, i32, i32) {
    %c0_i32 = arith.constant 0 : i32
    %c0_i32_0 = arith.constant 0 : i32
    %c0_i32_1 = arith.constant 0 : i32
    %c0_i32_2 = arith.constant 0 : i32
    return %arg0, %c0_i32, %c0_i32_0, %c0_i32_1 : i32, i32, i32, i32
  }
}

</mosaic_0001>

<bundles_post_ra>
// kernel: custom-call
= control target key start
LH: loop header
LB: loop body
LE: loop exit
PB: predicated region body
PF: predicated region fallthrough
CT: control target
= control target key end

     0   :  { %s236_s0 = inlined_call_operand.vmem [shape: f32[8,6,9], index: 0, kind: input, shape index: {}]   ;;  %s237_s2 = inlined_call_operand.vmem [shape: c64[8,6,9], index: 2, kind: output, shape index: {}]   ;;  %s238_s1 = inlined_call_operand.vmem [shape: f32[8,6,9], index: 1, kind: input, shape index: {}]  }
   0x1   :  { %v4_v0 = vld [vmem:[%s236_s0] sm:$0xff]  ;;  %v80_v1 = vld [vmem:[%s236_s0 + $0x8] sm:$0xff]  ;;  %v82_v2 = vld [vmem:[%s236_s0 + $0x10] sm:$0xff] }
   0x2   :  { %5 = vst [vmem:[%s237_s2] sm:$0xff] %v4_v0  ;;  %v84_v3 = vld [vmem:[%s236_s0 + $0x18] sm:$0xff]  ;;  %v86_v4 = vld [vmem:[%s236_s0 + $0x20] sm:$0xff]  ;;  %v88_v5 = vld [vmem:[%s236_s0 + $0x28] sm:$0xff] }
   0x3   :  { %81 = vst [vmem:[%s237_s2 + $0x8] sm:$0xff] %v80_v1  ;;  %v90_v6 = vld [vmem:[%s236_s0 + $0x30] sm:$0xff]  ;;  %v92_v7 = vld [vmem:[%s236_s0 + $0x38] sm:$0xff]  ;;  %v94_v8 = vld [vmem:[%s236_s0 + $0x40] sm:$0xff] }
   0x4   :  { %83 = vst [vmem:[%s237_s2 + $0x10] sm:$0xff] %v82_v2  ;;  %v38_v9 = vld [vmem:[%s238_s1] sm:$0xff]  ;;  %v97_v10 = vld [vmem:[%s238_s1 + $0x8] sm:$0xff]  ;;  %v99_v11 = vld [vmem:[%s238_s1 + $0x10] sm:$0xff] }
   0x5   :  { %85 = vst [vmem:[%s237_s2 + $0x18] sm:$0xff] %v84_v3  ;;  %v101_v12 = vld [vmem:[%s238_s1 + $0x18] sm:$0xff]  ;;  %v103_v13 = vld [vmem:[%s238_s1 + $0x20] sm:$0xff]  ;;  %v105_v14 = vld [vmem:[%s238_s1 + $0x28] sm:$0xff] }
   0x6   :  { %87 = vst [vmem:[%s237_s2 + $0x20] sm:$0xff] %v86_v4  ;;  %v107_v15 = vld [vmem:[%s238_s1 + $0x30] sm:$0xff]  ;;  %v109_v16 = vld [vmem:[%s238_s1 + $0x38] sm:$0xff]  ;;  %v111_v17 = vld [vmem:[%s238_s1 + $0x40] sm:$0xff] }
   0x7   :  { %89 = vst [vmem:[%s237_s2 + $0x28] sm:$0xff] %v88_v5 }
   0x8   :  { %91 = vst [vmem:[%s237_s2 + $0x30] sm:$0xff] %v90_v6 }
   0x9   :  { %93 = vst [vmem:[%s237_s2 + $0x38] sm:$0xff] %v92_v7 }
   0xa   :  { %95 = vst [vmem:[%s237_s2 + $0x40] sm:$0xff] %v94_v8 }
   0xb   :  { %96 = vst [vmem:[%s237_s2 + $0x48] sm:$0xff] %v38_v9 }
   0xc   :  { %98 = vst [vmem:[%s237_s2 + $0x50] sm:$0xff] %v97_v10 }
   0xd   :  { %100 = vst [vmem:[%s237_s2 + $0x58] sm:$0xff] %v99_v11 }
   0xe   :  { %102 = vst [vmem:[%s237_s2 + $0x60] sm:$0xff] %v101_v12 }
   0xf   :  { %104 = vst [vmem:[%s237_s2 + $0x68] sm:$0xff] %v103_v13 }
  0x10   :  { %106 = vst [vmem:[%s237_s2 + $0x70] sm:$0xff] %v105_v14 }
  0x11   :  { %108 = vst [vmem:[%s237_s2 + $0x78] sm:$0xff] %v107_v15 }
  0x12   :  { %110 = vst [vmem:[%s237_s2 + $0x80] sm:$0xff] %v109_v16 }
  0x13   :  { %112 = vst [vmem:[%s237_s2 + $0x88] sm:$0xff] %v111_v17 }

// kernel: spectral_conv1d_forward.1
= control target key start
LH: loop header
LB: loop body
LE: loop exit
PB: predicated region body
PF: predicated region fallthrough
CT: control target
= control target key end

     0   :  { %s901_s21 = smov 0   ;;  %s1006_s0 = inlined_call_operand.vmem [shape: f32[2,16,16], index: 0, kind: input, shape index: {}]   ;;  %s1007_s1 = inlined_call_operand.vmem [shape: f32[16,16], index: 1, kind: input, shape index: {}]   ;;  %s1008_s2 = inlined_call_operand.vmem [shape: f32[16,16], index: 2, kind: input, shape index: {}]   ;;  %s1009_s3 = inlined_call_operand.vmem [shape: f32[4,16,128], index: 3, kind: input, shape index: {}]   ;;  %s1010_s4 = inlined_call_operand.vmem [shape: f32[4,16,128], index: 4, kind: input, shape index: {}]   ;;  %s1011_s5 = inlined_call_operand.vmem [shape: f32[2,4,4,128], index: 5, kind: output, shape index: {0}]   ;;  %s1012_s6 = inlined_call_operand.vmem [shape: f32[2,4,4,128], index: 6, kind: output, shape index: {1}]  }
   0x1 LB: > { %s796_s22 = sadd.s32 4294967295, %s864_s21   ;;  %p800_p0 = scmp.ge.s32.totalorder %s864_s21, 1  ;;  %s864_s21 = sphi %s901_s21, %s17_s21  }
   0x2   : > { %p215_p1 = scmp.lt.s32.totalorder %s864_s21, 3 }
   0x4   : > { %p216_p2 = pnand %p800_p0, %p215_p1 }
   0x5   : > { %p250_p3 = scmp.lt.s32.totalorder (!%p216_p2), %s796_s22, 1 }
   0x6   : > { %219 = sbr.rel (%p216_p2) target bundleno = 309 (0x135), region = 40 }
   0xb   : > { %v268_v0 = vld [vmem:[%s1007_s1 + $0x8] sm:$0xff]  ;;  %v267_v2 = vld [vmem:[%s1007_s1] sm:$0xff]  ;;  %s1014_s22 = smov (!%p250_p3, %s796_s22), 1  ;;  %vm269_vm0 = vcmask 130048   ;;  %v816_v10 = vld [vmem:[%s1009_s3 + $0x18] sm:$0xff] }
   0xc   : > { %v300_v1 = vld [vmem:[%s1008_s2 + $0x8] sm:$0xff]  ;;  %290 = vmatpush.msra.mxu0 %v268_v0  ;;  %v299_v3 = vld [vmem:[%s1008_s2] sm:$0xff]  ;;  %s927_s11 = sshll.u32 %s1014_s22, 4  ;;  %v818_v11 = vld [vmem:[%s1010_s4 + $0x18] sm:$0xff] }
   0xd   : > { %315 = vmatpush.msra.mxu1 %v300_v1  ;;  %v325_v4 = vld [vmem:[%s1009_s3 + $0x8] sm:$0xff]  ;;  %s254_s14 = scalar_lea.vmem %s1006_s0, %s927_s11  ;;  %v324_v8 = vld [vmem:[%s1009_s3] sm:$0xff]  ;;  %v815_v12 = vld [vmem:[%s1009_s3 + $0x10] sm:$0xff]  ;;  %s259_s24 = scalar_lea.vmem %s1011_s5, %s927_s11 }
   0xe   : > { %v327_v5 = vld [vmem:[%s1010_s4 + $0x8] sm:$0xff]  ;;  %345 = vmatpush.msra.mxu2 %v325_v4  ;;  %291 = vmatpush.msra.mxu0 %v267_v2  ;;  %v265_v6 = vld [vmem:[%s254_s14] sm:$0xff]  ;;  %v817_v13 = vld [vmem:[%s1010_s4 + $0x10] sm:$0xff]  ;;  %s264_s27 = scalar_lea.vmem %s1012_s6, %s927_s11 }
   0xf   : > { %368 = vmatpush.msra.mxu3 %v327_v5  ;;  %316 = vmatpush.msra.mxu1 %v299_v3  ;;  %v266_v7 = vld [vmem:[%s254_s14 + $0x8] sm:$0xff]  ;;  %v326_v9 = vld [vmem:[%s1010_s4] sm:$0xff]  ;;  %v836_v22 = vld [vmem:[%s1009_s3 + $0x38] sm:$0xff] }
  0x10   : > { %807 = vmatmul.msk.f32.vlgmr.msra.gmra.mxu0 %vm269_vm0, %v265_v6  ;;  %809 = vmatmul.msk.f32.vlgmr.msra.gmra.mxu1 %vm269_vm0, %v265_v6  ;;  %v826_v14 = vld [vmem:[%s1009_s3 + $0x28] sm:$0xff]  ;;  %v825_v16 = vld [vmem:[%s1009_s3 + $0x20] sm:$0xff]  ;;  %v838_v23 = vld [vmem:[%s1010_s4 + $0x38] sm:$0xff] }
  0x11   : > { %346 = vmatpush.msra.mxu2 %v324_v8  ;;  %369 = vmatpush.msra.mxu3 %v326_v9  ;;  %v828_v15 = vld [vmem:[%s1010_s4 + $0x28] sm:$0xff]  ;;  %v827_v17 = vld [vmem:[%s1010_s4 + $0x20] sm:$0xff]  ;;  %v835_v24 = vld [vmem:[%s1009_s3 + $0x30] sm:$0xff] }
  0x12   : > { %440 = vmatpush.msrb.mxu0 %v816_v10  ;;  %463 = vmatpush.msrb.mxu1 %v818_v11  ;;  %v837_v25 = vld [vmem:[%s1010_s4 + $0x30] sm:$0xff] }
  0x13   : > { %388 = vmatpush.msrb.mxu2 %v325_v4  ;;  %410 = vmatpush.msrb.mxu3 %v327_v5 }
  0x14   : > { %441 = vmatpush.msrb.mxu0 %v815_v12  ;;  %464 = vmatpush.msrb.mxu1 %v817_v13 }
  0x15   : > { %389 = vmatpush.msrb.mxu2 %v324_v8  ;;  %411 = vmatpush.msrb.mxu3 %v326_v9 }
  0x16   : > { %537 = vmatpush.msra.mxu0 %v826_v14  ;;  %560 = vmatpush.msra.mxu1 %v828_v15 }
  0x18   : > { %808 = vmatmul.msk.f32.gmra.mxu0 %vm269_vm0, %v266_v7  ;;  %810 = vmatmul.msk.f32.gmra.mxu1 %vm269_vm0, %v266_v7 }
  0x19   : > { %538 = vmatpush.msra.mxu0 %v825_v16  ;;  %561 = vmatpush.msra.mxu1 %v827_v17 }
  0x8d   : > { %v293_v18 = vpop.f32.mrf.mxu0  ;;  %v318_v19 = vpop.f32.mrf.mxu1 }
  0x8e   : > { %v423_v20 = vrot.slane %v293_v18, 4  ;;  %v446_v21 = vrot.slane %v318_v19, 4  ;;  %811 = vmatmul.msk.f32.vlgmr.msra.gmra.mxu2 %vm269_vm0, %v293_v18  ;;  %812 = vmatmul.msk.f32.vlgmr.msra.gmra.mxu3 %vm269_vm0, %v318_v19 }
  0x8f   : > { %483 = vmatpush.msra.mxu2 %v816_v10  ;;  %506 = vmatpush.msra.mxu3 %v818_v11 }
  0x90   : > { %819 = vmatmul.msk.f32.vlgmr.msrb.gmra.mxu0 %vm269_vm0, %v423_v20  ;;  %820 = vmatmul.msk.f32.vlgmr.msrb.gmra.mxu1 %vm269_vm0, %v446_v21 }
  0x91   : > { %484 = vmatpush.msra.mxu2 %v815_v12  ;;  %507 = vmatpush.msra.mxu3 %v817_v13 }
  0x92   : > { %634 = vmatpush.msrb.mxu0 %v836_v22  ;;  %657 = vmatpush.msrb.mxu1 %v838_v23 }
  0x94   : > { %635 = vmatpush.msrb.mxu0 %v835_v24  ;;  %658 = vmatpush.msrb.mxu1 %v837_v25 }
  0x95   : > { %v296_v26 = vpop.f32.mrf.mxu0  ;;  %v321_v27 = vpop.f32.mrf.mxu1 }
  0x96   : > { %813 = vmatmul.msk.f32.vlgmr.msrb.gmra.mxu2 %vm269_vm0, %v318_v19  ;;  %814 = vmatmul.msk.f32.vlgmr.msrb.gmra.mxu3 %vm269_vm0, %v293_v18  ;;  %v617_v28 = vrot.slane %v296_v26, 4  ;;  %v640_v29 = vrot.slane %v321_v27, 4 }
  0x97   : > { %580 = vmatpush.msrb.mxu2 %v826_v14  ;;  %603 = vmatpush.msrb.mxu3 %v828_v15 }
  0x98   : > { %829 = vmatmul.msk.f32.vlgmr.msra.gmra.mxu0 %vm269_vm0, %v296_v26  ;;  %830 = vmatmul.msk.f32.vlgmr.msra.gmra.mxu1 %vm269_vm0, %v321_v27 }
  0x99   : > { %581 = vmatpush.msrb.mxu2 %v825_v16  ;;  %604 = vmatpush.msrb.mxu3 %v827_v17 }
  0x9e   : > { %821 = vmatmul.msk.f32.vlgmr.msra.gmra.mxu2 %vm269_vm0, %v446_v21  ;;  %823 = vmatmul.msk.f32.vlgmr.msra.gmra.mxu3 %vm269_vm0, %v423_v20 }
  0x9f   : > { %677 = vmatpush.msra.mxu2 %v836_v22  ;;  %700 = vmatpush.msra.mxu3 %v838_v23 }
  0xa0   : > { %839 = vmatmul.msk.f32.vlgmr.msrb.gmra.mxu0 %vm269_vm0, %v617_v28  ;;  %840 = vmatmul.msk.f32.vlgmr.msrb.gmra.mxu1 %vm269_vm0, %v640_v29 }
  0xa1   : > { %678 = vmatpush.msra.mxu2 %v835_v24  ;;  %701 = vmatpush.msra.mxu3 %v837_v25 }
  0xa6   : > { %831 = vmatmul.msk.f32.vlgmr.msrb.gmra.mxu2 %vm269_vm0, %v321_v27  ;;  %833 = vmatmul.msk.f32.vlgmr.msrb.gmra.mxu3 %vm269_vm0, %v296_v26 }
  0xae   : > { %841 = vmatmul.msk.f32.vlgmr.msra.gmra.mxu2 %vm269_vm0, %v640_v29  ;;  %843 = vmatmul.msk.f32.vlgmr.msra.gmra.mxu3 %vm269_vm0, %v617_v28 }
 0x10d   : > { %v443_v30 = vpop.f32.mrf.mxu0  ;;  %v466_v31 = vpop.f32.mrf.mxu1 }
 0x10e   : > { %v489_v32 = vsub.f32 %v443_v30, %v466_v31 }
 0x110   : > { %822 = vst [vmem:[%s259_s24 + $0x4] sm:$0xf] %v489_v32 }
 0x111   : > { %v348_v33 = vpop.f32.mrf.mxu2  ;;  %v371_v34 = vpop.f32.mrf.mxu3 }
 0x112   : > { %v394_v35 = vsub.f32 %v348_v33, %v371_v34 }
 0x114   : > { %395 = vst [vmem:[%s259_s24] sm:$0xf] %v394_v35 }
 0x115   : > { %v540_v36 = vpop.f32.mrf.mxu0  ;;  %v563_v37 = vpop.f32.mrf.mxu1 }
 0x116   : > { %v586_v38 = vsub.f32 %v540_v36, %v563_v37 }
 0x118   : > { %832 = vst [vmem:[%s259_s24 + $0x8] sm:$0xf] %v586_v38 }
 0x119   : > { %v391_v39 = vpop.f32.mrf.mxu2  ;;  %v413_v40 = vpop.f32.mrf.mxu3 }
 0x11a   : > { %v414_v41 = vadd.f32 %v413_v40, %v391_v39 }
 0x11c   : > { %416 = vst [vmem:[%s264_s27] sm:$0xf] %v414_v41 }
 0x11d   : > { %v637_v42 = vpop.f32.mrf.mxu0  ;;  %v660_v43 = vpop.f32.mrf.mxu1 }
 0x11e   : > { %v683_v44 = vsub.f32 %v637_v42, %v660_v43 }
 0x120   : > { %842 = vst [vmem:[%s259_s24 + $0xc] sm:$0xf] %v683_v44 }
 0x121   : > { %v486_v45 = vpop.f32.mrf.mxu2  ;;  %v509_v46 = vpop.f32.mrf.mxu3 }
 0x122   : > { %v510_v47 = vadd.f32 %v509_v46, %v486_v45 }
 0x124   : > { %824 = vst [vmem:[%s264_s27 + $0x4] sm:$0xf] %v510_v47 }
 0x129   : > { %v583_v48 = vpop.f32.mrf.mxu2  ;;  %v606_v49 = vpop.f32.mrf.mxu3 }
 0x12a   : > { %v607_v50 = vadd.f32 %v606_v49, %v583_v48 }
 0x12c   : > { %834 = vst [vmem:[%s264_s27 + $0x8] sm:$0xf] %v607_v50 }
 0x131   : > { %v680_v51 = vpop.f32.mrf.mxu2  ;;  %v703_v52 = vpop.f32.mrf.mxu3 }
 0x132   : > { %v704_v53 = vadd.f32 %v703_v52, %v680_v51 }
 0x134   : > { %844 = vst [vmem:[%s264_s27 + $0xc] sm:$0xf] %v704_v53 }
 0x135 PF: > { %s17_s21 = sadd.s32 1, %s864_s21  }
 0x136   : > { %p14_p4 = scmp.ge.s32.totalorder %s17_s21, 4  }
 0x138   :  { %16 = sbr.rel (!%p14_p4) target bundleno = 1 (0x1), region = 94 }

</bundles_post_ra>
